<compile_context>
chip_gen: v7x
topology: tpu7x:2x2x1
jax: 0.10.0
libtpu: 0.0.40
codegen_flags: <defaults>
</compile_context>

<pallas_src>
import math

import jax
import jax.numpy as jnp
import numpy as np
from jax import lax
from jax.experimental import pallas as pl
from jax.experimental.pallas import tpu as pltpu


def _round_up(v, m):
    return ((v + m - 1) // m) * m


def _pointnet_conv_kernel(res_ref, x_ref, w1_ref, w2_ref, out_ref, h_ref):
    """One grid step: a tile of source rows -> MLP -> scatter-max into [M, C_out]."""
    t = pl.program_id(1)

    @pl.when(t == 0)
    def _init():
        # local_nn ends in ReLU (outputs >= 0), so 0-init is identical to PyG's
        # empty-segment fill of 0 and lets padded rows (which produce exactly 0)
        # scatter anywhere without changing the result.
        out_ref[...] = jnp.zeros_like(out_ref)

    tile = x_ref.shape[0]
    m_out = out_ref.shape[0]

    # local_nn: two bf16 MXU matmuls with f32 accumulation; biases are folded
    # into the packed weights via the constant-1 column of x_aug.
    h1 = jnp.maximum(
        jnp.dot(x_ref[...], w1_ref[...], preferred_element_type=jnp.float32), 0.0)
    h2 = jnp.maximum(
        jnp.dot(h1.astype(w2_ref.dtype), w2_ref[...],
                preferred_element_type=jnp.float32), 0.0)
    h_ref[...] = h2                                            # [tile, C_out] f32

    base = (pl.program_id(0) * pl.num_programs(1) + t) * tile

    # PointNetConv 'max' aggregation: row-wise scatter-max keyed by residue id
    # read from SMEM. O(tile * C_out) work, no O(tile * M * C_out) broadcast.
    def body(r, carry):
        res = res_ref[base + r]
        res = jnp.clip(res, 0, m_out - 1)       # guard: never write OOB in VMEM
        cur = out_ref[pl.ds(res, 1), :]
        out_ref[pl.ds(res, 1), :] = jnp.maximum(cur, h_ref[pl.ds(r, 1), :])
        return carry

    lax.fori_loop(0, tile, body, 0)


def pack_local_nn_params(params, c_in, dtype=jnp.bfloat16):
    """Pack (w1x, w1p, b1, w2, b2) into two padded, bias-folded matrices."""
    w1x, w1p, b1, w2, b2 = params
    hidden = w1x.shape[1]
    c_out = w2.shape[1]
    k_aug = c_in + 3 + 1                    # features | rel-pos | constant 1
    k_pad = _round_up(k_aug, 16)            # bf16-friendly sublane multiple
    h_pad = _round_up(hidden + 1, 16)       # +1 column carries the "1" to layer 2

    w1_pack = jnp.zeros((k_pad, h_pad), jnp.float32)
    w1_pack = w1_pack.at[:c_in, :hidden].set(w1x)
    w1_pack = w1_pack.at[c_in:c_in + 3, :hidden].set(w1p)
    w1_pack = w1_pack.at[c_in + 3, :hidden].set(b1[0])     # bias 1 (via ones col)
    w1_pack = w1_pack.at[c_in + 3, hidden].set(1.0)        # carry "1" through ReLU

    w2_pack = jnp.zeros((h_pad, c_out), jnp.float32)
    w2_pack = w2_pack.at[:hidden, :].set(w2)
    w2_pack = w2_pack.at[hidden, :].set(b2[0])             # bias 2 (via carry col)
    return w1_pack.astype(dtype), w2_pack.astype(dtype)


def pointnet_conv_pallas(x, pos, residue_number, pos_dst, params, *,
                         tile=256, num_shards=2, compute_dtype=jnp.bfloat16):
    n, c_in = x.shape
    m = pos_dst.shape[0]
    w1_pack, w2_pack = pack_local_nn_params(params, c_in, compute_dtype)
    k_pad, h_pad = w1_pack.shape
    c_out = w2_pack.shape[1]

    # Shard / tile geometry (num_shards feeds the "parallel" grid axis for v7x's
    # two TensorCores; free on v5e/v6e).
    rows_per_shard = _round_up(pl.cdiv(n, num_shards), 16)
    tile = _round_up(min(tile, rows_per_shard), 16)
    tiles_per_shard = pl.cdiv(rows_per_shard, tile)
    n_pad = num_shards * tiles_per_shard * tile

    # rel-pos gather (plain XLA) + concat + bias-carrying ones column, built
    # directly at padded size. Padded rows are all-zero -> local_nn output 0,
    # which is the identity for the max-with-0-init aggregation.
    rel = pos - pos_dst[residue_number]
    x_aug = jnp.zeros((n_pad, k_pad), jnp.float32)
    x_aug = x_aug.at[:n, :c_in].set(x)
    x_aug = x_aug.at[:n, c_in:c_in + 3].set(rel)
    x_aug = x_aug.at[:n, c_in + 3].set(1.0)
    x_aug = x_aug.astype(compute_dtype)

    res_pad = jnp.zeros((n_pad,), jnp.int32).at[:n].set(
        residue_number.astype(jnp.int32))

    out = pl.pallas_call(
        _pointnet_conv_kernel,
        out_shape=jax.ShapeDtypeStruct((num_shards, m, c_out), jnp.float32),
        grid_spec=pltpu.PrefetchScalarGridSpec(
            num_scalar_prefetch=1,                       # residue ids -> SMEM
            grid=(num_shards, tiles_per_shard),
            in_specs=[
                pl.BlockSpec((tile, k_pad),
                             lambda p, t, res: (p * tiles_per_shard + t, 0)),
                pl.BlockSpec((k_pad, h_pad), lambda p, t, res: (0, 0)),   # W1
                pl.BlockSpec((h_pad, c_out), lambda p, t, res: (0, 0)),   # W2
            ],
            out_specs=pl.BlockSpec((None, m, c_out), lambda p, t, res: (p, 0, 0)),
            scratch_shapes=[pltpu.VMEM((tile, c_out), jnp.float32)],
        ),
        compiler_params=pltpu.CompilerParams(
            dimension_semantics=("parallel", "arbitrary")),
    )(res_pad, x_aug, w1_pack, w2_pack)

    # Combine per-shard partial maxes (all entries >= 0, 0 == empty-segment fill).
    return jnp.max(out, axis=0)


def fps_equal_batches(pos, num_batches, n_per, ratio):
    # TODO(synk): farthest-point sampling is inherently sequential / data-dependent;
    # implemented in plain JAX (lax.fori_loop) instead of inside the Pallas kernel.
    k = max(1, math.ceil(ratio * n_per))
    pos_b = pos.reshape(num_batches, n_per, -1)

    def fps_single(p):
        def body(i, state):
            idx, dists = state
            last = p[idx[i - 1]]
            d = jnp.sum((p - last) ** 2, axis=-1)
            dists = jnp.minimum(dists, d)
            nxt = jnp.argmax(dists).astype(jnp.int32)
            return idx.at[i].set(nxt), dists

        idx0 = jnp.zeros((k,), jnp.int32)                 # deterministic start at point 0
        dists0 = jnp.full((n_per,), jnp.inf, jnp.float32)
        idx, _ = lax.fori_loop(1, k, body, (idx0, dists0))
        return idx

    local = jax.vmap(fps_single)(pos_b)                   # [B, k]
    offsets = (jnp.arange(num_batches, dtype=jnp.int32) * n_per)[:, None]
    return (local + offsets).reshape(-1)                  # global indices, [B*k]


class AcidSAModulePallas:
    """JAX/Pallas equivalent of AcidSAModule(ratio, nn)."""

    def __init__(self, ratio, params):
        self.ratio = ratio
        self.params = params

    def __call__(self, x, pos, residue_number, batch, *, num_batches, n_per):
        idx = fps_equal_batches(pos, num_batches, n_per, self.ratio)
        pos_dst = pos[idx]
        x_out = pointnet_conv_pallas(x, pos, residue_number, pos_dst, self.params)
        return x_out, pos_dst, batch[idx]


def init_params(key, c_in, hidden, c_out):
    k1, k2, k3, k4 = jax.random.split(key, 4)
    w1 = jax.random.normal(k1, (c_in + 3, hidden), jnp.float32) / math.sqrt(c_in + 3)
    w1x, w1p = w1[:c_in], w1[c_in:]
    b1 = jax.random.normal(k2, (1, hidden), jnp.float32) * 0.01
    w2 = jax.random.normal(k3, (hidden, c_out), jnp.float32) / math.sqrt(hidden)
    b2 = jax.random.normal(k4, (1, c_out), jnp.float32) * 0.01
    return w1x, w1p, b1, w2, b2


if __name__ == "__main__":
    key = jax.random.PRNGKey(0)
    B, n_per, C_in, H, C_out = 2, 32, 16, 64, 128
    N = B * n_per
    ratio = 0.25
    k_per = math.ceil(ratio * n_per)       # 8 sampled per batch element
    M = B * k_per                          # 16 sampled points total

    kx, kp, kw = jax.random.split(key, 3)
    x = jax.random.normal(kx, (N, C_in), jnp.float32)
    pos = jax.random.normal(kp, (N, 3), jnp.float32)
    batch = jnp.repeat(jnp.arange(B, dtype=jnp.int32), n_per)
    # Each point maps to one of the M sampled "residue" centroids (4 points / residue).
    residue_number = (jnp.arange(N, dtype=jnp.int32) * M) // N

    params = init_params(kw, C_in, H, C_out)
    module = AcidSAModulePallas(ratio, params)

    x_out, pos_out, batch_out = module(x, pos, residue_number, batch,
                                       num_batches=B, n_per=n_per)
    jax.block_until_ready((x_out, pos_out, batch_out))

    # Pure-JAX (f32) reference check of the PointNetConv hot path.
    idx = fps_equal_batches(pos, B, n_per, ratio)
    w1x, w1p, b1, w2, b2 = params
    rel = pos - pos[idx][residue_number]
    h = jnp.maximum(x @ w1x + rel @ w1p + b1, 0.0)
    h = jnp.maximum(h @ w2 + b2, 0.0)
    ref = jax.ops.segment_max(h, residue_number, num_segments=M)
    ref = jnp.where(jnp.isfinite(ref), ref, 0.0)
    # Tolerance covers bf16 MXU inputs (f32 accumulation) vs the f32 reference.
    np.testing.assert_allclose(np.asarray(x_out), np.asarray(ref),
                               rtol=3e-2, atol=3e-2)
    assert pos_out.shape == (M, 3) and batch_out.shape == (M,)

    print("KERNEL_OK")
</pallas_src>

<mosaic_0001>
module attributes {stable_mosaic.version = 11 : i64} {
  func.func @_pointnet_conv_kernel(%arg0: i32, %arg1: i32, %arg2: memref<64xi32, #tpu.memory_space<smem>>, %arg3: memref<32x32xbf16, #tpu.memory_space<vmem>>, %arg4: memref<32x80xbf16, #tpu.memory_space<vmem>>, %arg5: memref<80x128xbf16, #tpu.memory_space<vmem>>, %arg6: memref<1x16x128xf32, #tpu.memory_space<vmem>>, %arg7: memref<32x128xf32, #tpu.memory_space<vmem>>) attributes {dimension_semantics = [#tpu.dimension_semantics<parallel>, #tpu.dimension_semantics<arbitrary>], iteration_bounds = array<i64: 2, 1>, scalar_prefetch = 1 : i64, scratch_operands = 1 : i64, tpu.core_type = #tpu.core_type<tc>, window_params = [{transform_indices = @transform_0, window_bounds = array<i64: 32, 32>}, {pipeline_mode = #tpu.pipeline_mode<synchronous>, transform_indices = @transform_1, window_bounds = array<i64: 32, 80>}, {pipeline_mode = #tpu.pipeline_mode<synchronous>, transform_indices = @transform_2, window_bounds = array<i64: 80, 128>}, {transform_indices = @transform_3, window_bounds = array<i64: 1, 16, 128>}]} {
    %c0_i32 = arith.constant 0 : i32
    %0 = arith.cmpi eq, %arg1, %c0_i32 : i32
    %1 = arith.extui %0 : i1 to i32
    %c0_i32_0 = arith.constant 0 : i32
    %2 = arith.cmpi ne, %1, %c0_i32_0 : i32
    scf.if %2 {
      %cst_15 = arith.constant 0.000000e+00 : f32
      %18 = vector.broadcast %cst_15 : f32 to vector<16x128xf32>
      %c0_16 = arith.constant 0 : index
      %c0_17 = arith.constant 0 : index
      %c0_18 = arith.constant 0 : index
      %19 = vector.load %arg6[%c0_16, %c0_17, %c0_18] : memref<1x16x128xf32, #tpu.memory_space<vmem>>, vector<1x16x128xf32>
      %20 = vector.shape_cast %19 : vector<1x16x128xf32> to vector<16x128xf32>
      %21 = vector.shape_cast %18 : vector<16x128xf32> to vector<1x16x128xf32>
      tpu.vector_store %arg6[%c0_16, %c0_17, %c0_18], %21 {strides = array<i32>} : memref<1x16x128xf32, #tpu.memory_space<vmem>>, vector<1x16x128xf32>,
    } else {
    }
    %c0 = arith.constant 0 : index
    %c0_1 = arith.constant 0 : index
    %3 = vector.load %arg3[%c0, %c0_1] : memref<32x32xbf16, #tpu.memory_space<vmem>>, vector<32x32xbf16>
    %c0_2 = arith.constant 0 : index
    %c0_3 = arith.constant 0 : index
    %4 = vector.load %arg4[%c0_2, %c0_3] : memref<32x80xbf16, #tpu.memory_space<vmem>>, vector<32x80xbf16>
    %cst = arith.constant dense<0.000000e+00> : vector<32x80xf32>
    %5 = tpu.matmul %3, %4, %cst {dimension_numbers = #tpu.dot_dimension_numbers<[1], [0], [0], [1], [0, 0, 1, 1], [], []>} : vector<32x32xbf16>, vector<32x80xbf16>, vector<32x80xf32> -> vector<32x80xf32>
    %cst_4 = arith.constant 0.000000e+00 : f32
    %6 = vector.broadcast %cst_4 : f32 to vector<32x80xf32>
    %7 = arith.maximumf %5, %6 : vector<32x80xf32>
    %8 = arith.truncf %7 : vector<32x80xf32> to vector<32x80xbf16>
    %c0_5 = arith.constant 0 : index
    %c0_6 = arith.constant 0 : index
    %9 = vector.load %arg5[%c0_5, %c0_6] : memref<80x128xbf16, #tpu.memory_space<vmem>>, vector<80x128xbf16>
    %cst_7 = arith.constant dense<0.000000e+00> : vector<32x128xf32>
    %10 = tpu.matmul %8, %9, %cst_7 {dimension_numbers = #tpu.dot_dimension_numbers<[1], [0], [0], [1], [0, 0, 1, 1], [], []>} : vector<32x80xbf16>, vector<80x128xbf16>, vector<32x128xf32> -> vector<32x128xf32>
    %cst_8 = arith.constant 0.000000e+00 : f32
    %11 = vector.broadcast %cst_8 : f32 to vector<32x128xf32>
    %12 = arith.maximumf %10, %11 : vector<32x128xf32>
    %c0_9 = arith.constant 0 : index
    %c0_10 = arith.constant 0 : index
    %13 = vector.load %arg7[%c0_9, %c0_10] : memref<32x128xf32, #tpu.memory_space<vmem>>, vector<32x128xf32>
    tpu.vector_store %arg7[%c0_9, %c0_10], %12 {strides = array<i32>} : memref<32x128xf32, #tpu.memory_space<vmem>>, vector<32x128xf32>,
    %c1_i32 = arith.constant 1 : i32
    %14 = arith.muli %arg0, %c1_i32 : i32
    %15 = arith.addi %14, %arg1 : i32
    %c32_i32 = arith.constant 32 : i32
    %16 = arith.muli %15, %c32_i32 : i32
    %c0_i32_11 = arith.constant 0 : i32
    %c32_i32_12 = arith.constant 32 : i32
    %17 = arith.addi %c0_i32_11, %c32_i32_12 : i32
    %c1_i32_13 = arith.constant 1 : i32
    scf.for %arg8 = %c0_i32_11 to %17 step %c1_i32_13  : i32 {
      %18 = arith.addi %16, %arg8 : i32
      %19 = arith.index_cast %18 : i32 to index
      %20 = memref.load %arg2[%19] : memref<64xi32, #tpu.memory_space<smem>>
      %c0_i32_15 = arith.constant 0 : i32
      %c15_i32 = arith.constant 15 : i32
      %21 = arith.maxsi %c0_i32_15, %20 : i32
      %22 = arith.minsi %c15_i32, %21 : i32
      %c0_16 = arith.constant 0 : index
      %23 = arith.index_cast %22 : i32 to index
      %c0_17 = arith.constant 0 : index
      %24 = vector.load %arg6[%c0_16, %23, %c0_17] : memref<1x16x128xf32, #tpu.memory_space<vmem>>, vector<1x1x128xf32>
      %25 = vector.shape_cast %24 : vector<1x1x128xf32> to vector<1x128xf32>
      %26 = arith.index_cast %arg8 : i32 to index
      %c0_18 = arith.constant 0 : index
      %27 = vector.load %arg7[%26, %c0_18] : memref<32x128xf32, #tpu.memory_space<vmem>>, vector<1x128xf32>
      %28 = arith.maximumf %25, %27 : vector<1x128xf32>
      %c0_19 = arith.constant 0 : index
      %29 = arith.index_cast %22 : i32 to index
      %c0_20 = arith.constant 0 : index
      %30 = vector.load %arg6[%c0_19, %29, %c0_20] : memref<1x16x128xf32, #tpu.memory_space<vmem>>, vector<1x1x128xf32>
      %31 = vector.shape_cast %30 : vector<1x1x128xf32> to vector<1x128xf32>
      %32 = vector.shape_cast %28 : vector<1x128xf32> to vector<1x1x128xf32>
      tpu.vector_store %arg6[%c0_19, %29, %c0_20], %32 {strides = array<i32>} : memref<1x16x128xf32, #tpu.memory_space<vmem>>, vector<1x1x128xf32>,
    }
    %c32_i32_14 = arith.constant 32 : i32
    return
  }
  func.func @transform_0(%arg0: i32, %arg1: i32, %arg2: memref<64xi32, #tpu.memory_space<smem>>) -> (i32, i32) {
    %c1_i32 = arith.constant 1 : i32
    %0 = arith.muli %arg0, %c1_i32 : i32
    %1 = arith.addi %0, %arg1 : i32
    %c0_i32 = arith.constant 0 : i32
    %c0_i32_0 = arith.constant 0 : i32
    return %1, %c0_i32 : i32, i32
  }
  func.func @transform_1(%arg0: i32, %arg1: i32, %arg2: memref<64xi32, #tpu.memory_space<smem>>) -> (i32, i32) {
    %c0_i32 = arith.constant 0 : i32
    %c0_i32_0 = arith.constant 0 : i32
    %c0_i32_1 = arith.constant 0 : i32
    return %c0_i32, %c0_i32_0 : i32, i32
  }
  func.func @transform_2(%arg0: i32, %arg1: i32, %arg2: memref<64xi32, #tpu.memory_space<smem>>) -> (i32, i32) {
    %c0_i32 = arith.constant 0 : i32
    %c0_i32_0 = arith.constant 0 : i32
    %c0_i32_1 = arith.constant 0 : i32
    return %c0_i32, %c0_i32_0 : i32, i32
  }
  func.func @transform_3(%arg0: i32, %arg1: i32, %arg2: memref<64xi32, #tpu.memory_space<smem>>) -> (i32, i32, i32) {
    %c0_i32 = arith.constant 0 : i32
    %c0_i32_0 = arith.constant 0 : i32
    %c0_i32_1 = arith.constant 0 : i32
    return %arg0, %c0_i32, %c0_i32_0 : i32, i32, i32
  }
}

</mosaic_0001>

<bundles_post_ra>
// kernel: tpu_custom_call.1
= control target key start
LH: loop header
LB: loop body
LE: loop exit
PB: predicated region body
PF: predicated region fallthrough
CT: control target
= control target key end

     0   :  { %s938_s0 = inlined_call_operand.vmem [shape: s32[64], index: 0, kind: input, shape index: {}]   ;;  %s939_s1 = inlined_call_operand.vmem [shape: bf16[64,32], index: 1, kind: input, shape index: {}]   ;;  %s940_s2 = inlined_call_operand.vmem [shape: bf16[32,80], index: 2, kind: input, shape index: {}]   ;;  %s941_s3 = inlined_call_operand.vmem [shape: bf16[80,128], index: 3, kind: input, shape index: {}]   ;;  %s942_s4 = inlined_call_operand.hbm [shape: f32[2,16,128], index: 4, kind: output, shape index: {}]  }
   0x1   :  { %s9_s17 = sshll.u32 %s938_s0, 4  ;;  %s10_s17 = int_to_ptr.vmem [resolvable:$true] %s9_s17 }
   0x2   :  { %s655_s18 = scalar_lea.vmem %s10_s17, 16  ;;  %p660_p1 = scmp.lt.s32.totalorder %s10_s17, %s10_s17 }
   0x3   :  { %p656_p0 = scmp.ne.s32.totalorder %s10_s17, %s655_s18  ;;  %p661_p2 = scmp.lt.s32.totalorder %s655_s18, %s655_s18 }
   0x5   :  { %p662_p3 = por %p661_p2, %p660_p1 }
   0x7   :  { %p663_p4 = pnand %p662_p3, %p656_p0 }
   0x9   :  { %666 = shalt.err (!%p663_p4)  }
   0xa   :  { %s757_s19 = smov [#allocation4]  }
   0xb   :  { %12 = dma.vmem_to_smem %s10_s17, 16, %s757_s19, [#allocation3] }
   0xc   :  { %723 = dma.done.wait [#allocation3], 16 }
   0xd   :  { %724 = vsyncadd [#allocation3], 4294967280 }
   0xe   :  { %14 = sfence }
   0xf   :  { %15 = vsyncpa [#allocation6], 0 }
  0x10   :  { %17 = vsyncpa [#allocation6 + $0x1], 0  ;;  %s790_s20 = smov 0   ;;  %s792_s21 = smov 0  }
  0x11   :  { %s794_s0 = smov 0   ;;  %s796_s22 = smov 0  }
  0x12   :  { %s798_s23 = smov 0   ;;  %s800_s24 = smov 0  }
  0x13 LB: > { %s511_s25 = sadd.s32 4294967295, %s751_s24   ;;  %s512_s26 = sadd.s32 4294967294, %s751_s24   ;;  %s751_s24 = sphi %s800_s24, %s23_s24   ;;  %s747_s23 = sphi %s798_s23, %s949_s23   ;;  %s743_s22 = sphi %s796_s22, %s948_s22   ;;  %s739_s0 = sphi %s794_s0, %s947_s0   ;;  %s735_s21 = sphi %s792_s21, %s946_s21   ;;  %s731_s20 = sphi %s790_s20, %s945_s20  }
  0x14   : > { %s35_s27 = sadd.s32 1, %s747_s23  ;;  %s112_s28 = sadd.s32 1, %s739_s0 }
  0x15   : > { %p37_p5 = scmp.ge.s32.totalorder %s35_s27, 2  ;;  %p122_p6 = scmp.ne.s32.totalorder %s739_s0, %s735_s21 }
  0x16   : > { %p123_p7 = scmp.eq.s32.totalorder %s511_s25, 1  ;;  %p128_p8 = scmp.ne.s32.totalorder %s735_s21, %s731_s20 }
  0x17   : > { %s951_s27 = smov (%p37_p5, %s35_s27), 0  ;;  %p129_p10 = scmp.eq.s32.totalorder %s512_s26, 1 }
  0x18   : > { %p830_p9 = por %p123_p7, %p122_p6  ;;  %s109_s30 = ssub.s32 %s747_s23, %s951_s27 }
  0x19   : > { %p515_p11 = scmp.ge.s32.totalorder %s751_s24, 1  ;;  %p110_p12 = scmp.eq.s32.totalorder %s109_s30, 0 }
  0x1a   : > { %p837_p13 = por %p129_p10, %p128_p8  ;;  %p164_p0 = scmp.lt.s32.totalorder %s751_s24, 3 }
  0x1b   : > { %s843_s6 = scalar_select %p110_p12, %s739_s0, %s112_s28  }
  0x1c   : > { %p165_p1 = pnand %p515_p11, %p164_p0 }
  0x1d   : > { %s186_s7 = sand.u32 (!%p165_p1), 1, %s735_s21   ;;  %v646_v0 = vld [vmem:[%s940_s2] sm:$0xff] (!%p165_p1)   ;;  %v647_v1 = vld [vmem:[%s940_s2 + $0x8] sm:$0xff] (!%p165_p1)   ;;  %s517_s13 = sshll.u32 (!%p165_p1), %s743_s22, 2  ;;  %v758_v2 = vmov (!%p165_p1), 0.0   ;;  %v652_v5 = vld [vmem:[%s941_s3 + $0x10] sm:$0xff] (!%p165_p1)  }
  0x1e   : > { %168 = sbr.rel (%p165_p1) target bundleno = 512 (0x200), region = 32  ;;  %s516_s8 = sshll.u32 (!%p165_p1), %s186_s7, 4  ;;  %557 = vmatprep.subr.bf16.mxu0 (!%p165_p1), %v646_v0  ;;  %v650_v3 = vld [vmem:[%s941_s3] sm:$0xff] (!%p165_p1)   ;;  %v651_v4 = vld [vmem:[%s941_s3 + $0x8] sm:$0xff] (!%p165_p1)   ;;  %vm234_vm0 = vcmask (!%p165_p1), 261120   ;;  %v653_v8 = vld [vmem:[%s941_s3 + $0x18] sm:$0xff] (!%p165_p1)  }
  0x1f   : > { %s855_s14 = scalar_lea.vmem (!%p165_p1), [#allocation5], %s516_s8  ;;  %p191_p2 = scmp.lt.s32.totalorder (!%p165_p1), %s517_s13, 7  ;;  %558 = vmatpush3.bf16.msra.mxu0 (!%p165_p1), %v646_v0  ;;  %565 = vmatprep.subr.bf16.mxu1 (!%p165_p1), %v650_v3  ;;  %v654_v9 = vld [vmem:[%s941_s3 + $0x20] sm:$0xff] (!%p165_p1)   ;;  %vm336_vm1 = vcmask (!%p165_p1), 654336  }
  0x20   : > { %202 = vst [vmem:[%s855_s14] sm:$0xff] (!%p165_p1), %v758_v2  ;;  %203 = vst [vmem:[%s855_s14 + $0x8] sm:$0xff] (!%p165_p1), %v758_v2  ;;  %559 = vmatprep.subr.bf16.mxu0 (!%p165_p1), %v647_v1  ;;  %566 = vmatpush3.bf16.msra.mxu1 (!%p165_p1), %v650_v3  ;;  %s753_s15 = smov (!%p165_p1), 0  }
  0x21   : > { %567 = vmatprep.subr.bf16.mxu1 (!%p165_p1), %v651_v4 }
  0x23   : > { %560 = vmatpush3.bf16.msra.mxu0 (!%p165_p1), %v647_v1 }
  0x24   : > { %568 = vmatpush3.bf16.msra.mxu1 (!%p165_p1), %v651_v4 }
  0x25   : > { %s953_s13 = smov (!%p191_p2, %s517_s13), 7  ;;  %569 = vmatprep.subr.bf16.mxu1 %v652_v5 }
  0x26   : > { %s518_s19 = sshll.u32 %s953_s13, 2  ;;  %s532_s13 = sshll.u32 %s743_s22, 5 }
  0x27   : > { %s194_s8 = scalar_lea.vmem %s939_s1, %s518_s19 }
  0x28   : > { %v648_v6 = vld [vmem:[%s194_s8] sm:$0xff]   ;;  %v649_v7 = vld [vmem:[%s194_s8 + $0x8] sm:$0xff]   ;;  %570 = vmatpush3.bf16.msra.mxu1 %v652_v5 }
  0x29   : > { %561 = vmatprep.mubr.msk.bf16.mxu0 %vm234_vm0, %v648_v6  ;;  %571 = vmatprep.subr.bf16.mxu1 %v653_v8 }
  0x2a   : > { %562 = vmatmul.mubr.msk.bf16.vlgmr.msra.gmra.mrb[0].mxu0 %vm234_vm0, %v649_v7 }
  0x2c   : > { %572 = vmatpush3.bf16.msra.mxu1 %v653_v8 }
  0x2d   : > { %573 = vmatprep.subr.bf16.mxu1 %v654_v9 }
  0x30   : > { %574 = vmatpush3.bf16.msra.mxu1 %v654_v9 }
  0xfd   : > { %v563_v10 = vpop.f32.mrb[0].mxu0 }
  0xfe   : > { %v275_v11 = vpop.f32.mrb[1].mxu0  ;;  %v292_v13 = vmax.f32 %v563_v10, 0.0 }
  0xff   : > { %v564_v12 = vpop.f32.mrb[2].mxu0  ;;  %v290_v16 = vmax.f32 %v275_v11, 0.0 }
 0x100   : > { %v293_v14 = vmax.f32 %v564_v12, 0.0  ;;  %v278_v15 = vpop.f32.mrb[3].mxu0 }
 0x101   : > { %v291_v17 = vmax.f32 %v278_v15, 0.0 }
 0x102   : > { %v295_v18 = vpack.c.bf16 %v293_v14, %v292_v13 }
 0x103   : > { %v294_v19 = vpack.c.bf16 %v291_v17, %v290_v16 }
 0x105   : > { %575 = vmatprep.mubr.msk.bf16.mxu1 %vm336_vm1, %v294_v19 }
 0x106   : > { %576 = vmatmul.mubr.msk.bf16.vlgmr.msra.gmra.mrb[0].mxu1 %vm336_vm1, %v295_v18 }
 0x1d9   : > { %v577_v20 = vpop.f32.mrb[0].mxu1 }
 0x1da   : > { %v394_v21 = vmax.f32 %v577_v20, 0.0  ;;  %v377_v22 = vpop.f32.mrb[1].mxu1 }
 0x1db   : > { %v392_v23 = vmax.f32 %v377_v22, 0.0  ;;  %v578_v24 = vpop.f32.mrb[2].mxu1 }
 0x1dc   : > { %398 = vst [vmem:[#allocation2 + $0x10] sm:$0xff] %v394_v21  ;;  %v395_v25 = vmax.f32 %v578_v24, 0.0  ;;  %v380_v26 = vpop.f32.mrb[3].mxu1 }
 0x1dd   : > { %396 = vst [vmem:[#allocation2] sm:$0xff] %v392_v23  ;;  %v393_v27 = vmax.f32 %v380_v26, 0.0 }
 0x1de   : > { %399 = vst [vmem:[#allocation2 + $0x18] sm:$0xff] %v395_v25 }
 0x1df   : > { %397 = vst [vmem:[#allocation2 + $0x8] sm:$0xff] %v393_v27 }
 0x1e0 LB: >> { %s408_s16 = sadd.s32 %s755_s15, %s532_s13  ;;  %s416_s18 = scalar_lea.vmem [#allocation2], %s755_s15  ;;  %s755_s15 = sphi %s753_s15, %s407_s15  }
 0x1e1   : >> { %s409_s17 = sld [smem:[#allocation4 + %s408_s16]]  ;;  %s407_s15 = sadd.s32 1, %s755_s15  }
 0x1e2   : >> { %p404_p5 = scmp.ge.s32.totalorder %s407_s15, 32  }
 0x1e3   : > { %s545_s25 = sshll.u32 (%p404_p5), %s743_s22, 8  ;;  %s434_s8 = sshll.u32 (%p404_p5), %s855_s14, 4  ;;  %s888_s8 = int_to_ptr.vmem [resolvable:$true] %s434_s8 }
 0x1e4   : > { %s885_s30 = scalar_lea.hbm (%p404_p5), %s942_s4, %s545_s25  ;;  %s892_s9 = scalar_lea.sflag (%p404_p5), [#allocation6], %s186_s7 }
 0x1e5   : > { %s667_s10 = scalar_lea.vmem (%p404_p5), %s888_s8, 256  ;;  %s759_s22 = smov (%p404_p5), [#allocation5]  }
 0x1e6   : >> { %v417_v28 = vld [vmem:[%s416_s18] sm:$0x1]  ;;  %p668_p6 = scmp.ne.s32.totalorder (%p404_p5), %s888_s8, %s667_s10  ;;  %s671_s11 = sshll.u32 (%p404_p5), %s759_s22, 4  ;;  %s672_s11 = int_to_ptr.vmem [resolvable:$false] %s671_s11 }
 0x1e7   : >> { %p410_p3 = scmp.gt.s32.totalorder %s409_s17, 0  ;;  %p533_p4 = scmp.lt.s32.totalorder %s409_s17, 15 }
 0x1e8   : > { %p669_p7 = pnand (%p404_p5), %p668_p6, %p830_p9  ;;  %s673_s12 = scalar_lea.vmem (%p404_p5), %s672_s11, 512 }
 0x1e9   : >> { %s955_s17 = smov (!%p410_p3, %s409_s17), 0  ;;  %406 = sbr.rel (!%p404_p5) target bundleno = 480 (0x1e0), region = 80 }
 0x1ea   : >> { %s957_s17 = smov (!%p533_p4, %s955_s17), 15  ;;  %p670_p8 = pneg (%p404_p5), %p669_p7 }
 0x1eb   : >> { %s414_s19 = scalar_lea.vmem %s855_s14, %s957_s17 [#allocation5]  ;;  %p674_p10 = scmp.lt.s32.totalorder (%p404_p5), %s888_s8, %s672_s11 }
 0x1ec   : >> { %v415_v29 = vld [vmem:[%s414_s19] sm:$0x1]  ;;  %p675_p11 = scmp.lt.s32.totalorder (%p404_p5), %s673_s12, %s667_s10 }
 0x1ed   : >> { %v418_v30 = vmax.f32 %v415_v29, %v417_v28 }
 0x1ee   : > { %p676_p12 = por (%p404_p5), %p675_p11, %p674_p10 }
 0x1ef   : >> { %419 = vst [vmem:[%s414_s19] sm:$0x1] %v418_v30 }
 0x1f0   : > { %p677_p0 = pnand %p676_p12, %p670_p8 }
 0x1f2   : > { %680 = shalt.err (!%p677_p0)
}
 0x1f3   : > { %s681_s7 = scalar_lea.hbm %s885_s30, 256  ;;  %s685_s15 = scalar_lea.hbm %s942_s4, 512 }
 0x1f4   : > { %p682_p1 = scmp.ne.s32.totalorder %s885_s30, %s681_s7  ;;  %p686_p4 = scmp.lt.u32.totalorder %s885_s30, %s942_s4 }
 0x1f5   : > { %p687_p5 = scmp.lt.u32.totalorder %s685_s15, %s681_s7  ;;  %p689_p7 = scmp.lt.u32.totalorder %s681_s7, %s885_s30 }
 0x1f6   : > { %p683_p2 = pnand %p682_p1, %p830_p9 }
 0x1f7   : > { %p688_p6 = por %p687_p5, %p686_p4 }
 0x1f8   : > { %p684_p3 = pneg %p683_p2 }
 0x1f9   : > { %p690_p8 = por %p689_p7, %p688_p6 }
 0x1fb   : > { %p691_p10 = pnand %p690_p8, %p684_p3 }
 0x1fd   : > { %694 = shalt.err (!%p691_p10)
}
 0x1fe   : > { %s760_s18 = smov 128   ;;  %s761_s19 = smov 8  }
 0x1ff   : > { %579 = dma.vmem_to_hbm [thread:$0]  (%p830_p9), %s888_s8, 256, %s885_s30, %s892_s9, %s760_s18, %s760_s18, %s761_s19  }
 0x200 PF: > { %p585_p11 = scmp.ge.s32.totalorder %s751_s24, 2  ;;  %s449_s25 = sand.u32 1, %s731_s20  }
 0x201   : > { %s450_s26 = scalar_lea.sflag [#allocation6], %s449_s25 }
 0x202   : > { %p582_p12 = pnand %p585_p11, %p837_p13 }
 0x204   : > { %726 = dma.done.wait (!%p582_p12), %s450_s26, 256  }
 0x205   : > { %728 = vsyncadd (!%p582_p12), %s450_s26, 4294967040  ;;  %s23_s24 = sadd.s32 1, %s751_s24   ;;  %s945_s20 = smov %s735_s21 }
 0x206   : > { %p20_p0 = scmp.ge.s32.totalorder %s23_s24, 4   ;;  %s946_s21 = smov %s739_s0 }
 0x207   : > { %s947_s0 = smov %s843_s6  ;;  %s948_s22 = smov %s747_s23 }
 0x208   : > { %s949_s23 = smov %s951_s27  ;;  %22 = sbr.rel (!%p20_p0) target bundleno = 19 (0x13), region = 91 }
 0x20f   :  { %455 = vsyncpa [#allocation6], 1 }
 0x210   :  { %457 = vsyncpa [#allocation6 + $0x1], 1 }

</bundles_post_ra>
